<compile_context>
chip_gen: v7x
topology: tpu7x:2x2x1
jax: 0.10.0
libtpu: 0.0.40
codegen_flags: <defaults>
</compile_context>

<pallas_src>
import jax
import jax.numpy as jnp
from jax.experimental import pallas as pl
from jax.experimental.pallas import tpu as pltpu


def _weighted_bmm_kernel(lf_ref, lbs_ref, out_ref):
    # lf_ref:  (F, K)   per-batch local features (transposed; tiny, re-used across T tiles)
    # lbs_ref: (K, TT)  skinning weights, lane-dense along the points axis
    # out_ref: (F, TT)  lane-dense output tile
    out_ref[...] = jnp.dot(
        lf_ref[...], lbs_ref[...], preferred_element_type=jnp.float32
    ).astype(out_ref.dtype)


def local_feature_encoder(shape_code, structure_code, pose_code, lbs_weights,
                          weight, bias, *, num_joints, point_feature_len,
                          tile_t=1024, compute_dtype=jnp.bfloat16):
    """weight: (K*F, Z) squeezed Conv1d weight; bias: (K*F,). Returns (B, T, F)."""
    codes = [c for c in (shape_code, structure_code, pose_code) if c is not None]
    g = jnp.concatenate(codes, axis=-1)                       # (B, Z)
    B, Z = g.shape
    _, T, K = lbs_weights.shape
    F = point_feature_len
    assert K == num_joints
    assert weight.shape == (K * F, Z)
    assert bias.shape == (K * F,)

    # ---- grouped 1x1 conv, hoisted out of the grid (one proper GEMM) --------
    # groups=K and the PyTorch forward repeats the SAME concatenated code for
    # every group, so each group contracts the identical (B, Z) code with its
    # own (F, Z) weight slice: equivalent to a single (B,Z) x (Z,K*F) matmul.
    local = (g @ weight.T + bias).reshape(B, K, F)            # (B, K, F)

    # ---- lane-dense layouts: put the large T axis last (wrapper plumbing) ---
    local_fk = jnp.transpose(local, (0, 2, 1))                # (B, F, K)
    lbs_kt = jnp.transpose(lbs_weights, (0, 2, 1))            # (B, K, T)
    if compute_dtype is not None:
        local_fk = local_fk.astype(compute_dtype)
        lbs_kt = lbs_kt.astype(compute_dtype)
    out_dtype = local_fk.dtype

    # ---- T tiling: lane-aligned tiles, zero-pad if ragged --------------------
    if T > tile_t:
        TT = max(128, (min(tile_t, T) // 128) * 128)          # multiple of 128
        T_pad = pl.cdiv(T, TT) * TT
        if T_pad != T:
            lbs_kt = jnp.pad(lbs_kt, ((0, 0), (0, 0), (0, T_pad - T)))
    else:
        TT, T_pad = T, T                                      # single full tile
    num_t_tiles = T_pad // TT

    # Double-buffered per-step VMEM: 2 * itemsize * (F*K + (K+F)*TT)
    # ~0.3 MiB at TT=2048 / bf16, so 32 MiB leaves huge headroom on every
    # generation (<= v7x's 64 MiB physical, <= v5e/v6e's 128 MiB physical).
    vmem_limit = 32 * 1024 * 1024

    out_ft = pl.pallas_call(
        _weighted_bmm_kernel,
        out_shape=jax.ShapeDtypeStruct((B, F, T_pad), out_dtype),
        grid_spec=pltpu.PrefetchScalarGridSpec(
            num_scalar_prefetch=0,
            grid=(B, num_t_tiles),
            in_specs=[
                # Per-batch local features; leading size-1 batch dim squeezed
                # so the kernel sees clean 2-D tiles.
                pl.BlockSpec((None, F, K), lambda b, t: (b, 0, 0)),
                # Per-(batch, T-tile) skinning weights, lane-dense along T.
                pl.BlockSpec((None, K, TT), lambda b, t: (b, 0, t)),
            ],
            out_specs=pl.BlockSpec((None, F, TT), lambda b, t: (b, 0, t)),
        ),
        compiler_params=pltpu.CompilerParams(
            dimension_semantics=("parallel", "parallel"),
            vmem_limit_bytes=vmem_limit,
        ),
    )(local_fk, lbs_kt)

    # Back to the module's (B, T, F) output layout; drop T padding.
    return jnp.transpose(out_ft[:, :, :T], (0, 2, 1))


if __name__ == "__main__":
    num_joints, point_feature_len = 4, 32                     # K, F
    z_shape, z_struct, z_pose = 6, 5, 5                       # concat -> Z = 16
    Z = z_shape + z_struct + z_pose

    key = jax.random.PRNGKey(0)
    (k_w, k_b, k1, k2, k3, k4, k5, k6, k7, k8) = jax.random.split(key, 10)

    # nn.Conv1d(K*Z, K*F, kernel_size=1, groups=K) params:
    # weight (K*F, Z, 1) squeezed to (K*F, Z); bias (K*F,)
    weight = 0.05 * jax.random.normal(
        k_w, (num_joints * point_feature_len, Z), jnp.float32)
    bias = 0.05 * jax.random.normal(
        k_b, (num_joints * point_feature_len,), jnp.float32)

    def reference(sc, stc, pc, lbs):
        gf = jnp.concatenate([sc, stc, pc], axis=-1)
        lf = (gf @ weight.T + bias).reshape(gf.shape[0], num_joints, point_feature_len)
        return jnp.einsum('btk,bkf->btf', lbs, lf)

    # --- case 1: tiny shapes, f32, single T tile (exact check) ----------------
    B, T = 2, 8
    shape_code = jax.random.normal(k1, (B, z_shape), jnp.float32)
    structure_code = jax.random.normal(k2, (B, z_struct), jnp.float32)
    pose_code = jax.random.normal(k3, (B, z_pose), jnp.float32)
    lbs = jax.nn.softmax(
        jax.random.normal(k4, (B, T, num_joints), jnp.float32), axis=-1)

    out = local_feature_encoder(
        shape_code, structure_code, pose_code, lbs, weight, bias,
        num_joints=num_joints, point_feature_len=point_feature_len,
        compute_dtype=None)                                   # exact f32 path
    out = jax.block_until_ready(out)
    assert out.shape == (B, T, point_feature_len)
    ref = reference(shape_code, structure_code, pose_code, lbs)
    assert jnp.allclose(out, ref, atol=1e-5, rtol=1e-5)

    # --- case 2: ragged T, bf16 compute, tiled + padded path -------------------
    B2, T2 = 2, 300
    shape_code2 = jax.random.normal(k5, (B2, z_shape), jnp.float32)
    structure_code2 = jax.random.normal(k6, (B2, z_struct), jnp.float32)
    pose_code2 = jax.random.normal(k7, (B2, z_pose), jnp.float32)
    lbs2 = jax.nn.softmax(
        jax.random.normal(k8, (B2, T2, num_joints), jnp.float32), axis=-1)

    out2 = local_feature_encoder(
        shape_code2, structure_code2, pose_code2, lbs2, weight, bias,
        num_joints=num_joints, point_feature_len=point_feature_len,
        tile_t=128, compute_dtype=jnp.bfloat16)               # exercises tiling/pad
    out2 = jax.block_until_ready(out2)
    assert out2.shape == (B2, T2, point_feature_len)
    assert out2.dtype == jnp.bfloat16
    ref2 = reference(shape_code2, structure_code2, pose_code2, lbs2)
    assert jnp.allclose(out2.astype(jnp.float32), ref2, atol=3e-2, rtol=3e-2)

    print("KERNEL_OK")
</pallas_src>

<mosaic_0001>
module attributes {stable_mosaic.version = 11 : i64} {
  func.func @_weighted_bmm_kernel(%arg0: i32, %arg1: i32, %arg2: memref<1x32x4xf32, #tpu.memory_space<vmem>>, %arg3: memref<1x4x8xf32, #tpu.memory_space<vmem>>, %arg4: memref<1x32x8xf32, #tpu.memory_space<vmem>>) attributes {dimension_semantics = [#tpu.dimension_semantics<parallel>, #tpu.dimension_semantics<parallel>], iteration_bounds = array<i64: 2, 1>, scalar_prefetch = 0 : i64, scratch_operands = 0 : i64, tpu.core_type = #tpu.core_type<tc>, window_params = [{transform_indices = @transform_0, window_bounds = array<i64: 1, 32, 4>}, {transform_indices = @transform_1, window_bounds = array<i64: 1, 4, 8>}, {transform_indices = @transform_2, window_bounds = array<i64: 1, 32, 8>}]} {
    %c0 = arith.constant 0 : index
    %c0_0 = arith.constant 0 : index
    %c0_1 = arith.constant 0 : index
    %0 = vector.load %arg2[%c0, %c0_0, %c0_1] : memref<1x32x4xf32, #tpu.memory_space<vmem>>, vector<1x32x4xf32>
    %1 = vector.shape_cast %0 : vector<1x32x4xf32> to vector<32x4xf32>
    %c0_2 = arith.constant 0 : index
    %c0_3 = arith.constant 0 : index
    %c0_4 = arith.constant 0 : index
    %2 = vector.load %arg3[%c0_2, %c0_3, %c0_4] : memref<1x4x8xf32, #tpu.memory_space<vmem>>, vector<1x4x8xf32>
    %3 = vector.shape_cast %2 : vector<1x4x8xf32> to vector<4x8xf32>
    %cst = arith.constant dense<0.000000e+00> : vector<32x8xf32>
    %4 = tpu.matmul %1, %3, %cst {dimension_numbers = #tpu.dot_dimension_numbers<[1], [0], [0], [1], [0, 0, 1, 1], [], []>} : vector<32x4xf32>, vector<4x8xf32>, vector<32x8xf32> -> vector<32x8xf32>
    %c0_5 = arith.constant 0 : index
    %c0_6 = arith.constant 0 : index
    %c0_7 = arith.constant 0 : index
    %5 = vector.load %arg4[%c0_5, %c0_6, %c0_7] : memref<1x32x8xf32, #tpu.memory_space<vmem>>, vector<1x32x8xf32>
    %6 = vector.shape_cast %5 : vector<1x32x8xf32> to vector<32x8xf32>
    %7 = vector.shape_cast %4 : vector<32x8xf32> to vector<1x32x8xf32>
    tpu.vector_store %arg4[%c0_5, %c0_6, %c0_7], %7 {strides = array<i32>} : memref<1x32x8xf32, #tpu.memory_space<vmem>>, vector<1x32x8xf32>,
    return
  }
  func.func @transform_0(%arg0: i32, %arg1: i32) -> (i32, i32, i32) {
    %c0_i32 = arith.constant 0 : i32
    %c0_i32_0 = arith.constant 0 : i32
    %c0_i32_1 = arith.constant 0 : i32
    return %arg0, %c0_i32, %c0_i32_0 : i32, i32, i32
  }
  func.func @transform_1(%arg0: i32, %arg1: i32) -> (i32, i32, i32) {
    %c0_i32 = arith.constant 0 : i32
    %c0_i32_0 = arith.constant 0 : i32
    return %arg0, %c0_i32, %arg1 : i32, i32, i32
  }
  func.func @transform_2(%arg0: i32, %arg1: i32) -> (i32, i32, i32) {
    %c0_i32 = arith.constant 0 : i32
    %c0_i32_0 = arith.constant 0 : i32
    return %arg0, %c0_i32, %arg1 : i32, i32, i32
  }
}

</mosaic_0001>

<bundles_post_ra>
// kernel: tpu_custom_call.1
= control target key start
LH: loop header
LB: loop body
LE: loop exit
PB: predicated region body
PF: predicated region fallthrough
CT: control target
= control target key end

     0   :  { %s493_s9 = smov 0   ;;  %s495_s10 = smov 0   ;;  %s529_s0 = inlined_call_operand.vmem [shape: f32[2,32,4], index: 0, kind: input, shape index: {}]   ;;  %s530_s1 = inlined_call_operand.vmem [shape: f32[2,4,8], index: 1, kind: input, shape index: {}]   ;;  %s531_s2 = inlined_call_operand.vmem [shape: f32[2,32,8], index: 2, kind: output, shape index: {}]  }
   0x1   :  { %s497_s11 = smov 0  }
   0x2 LB: > { %s24_s12 = sadd.s32 1, %s472_s10  ;;  %p400_p0 = scmp.ge.s32.totalorder %s476_s11, 1  ;;  %s476_s11 = sphi %s497_s11, %s12_s11   ;;  %s472_s10 = sphi %s495_s10, %s533_s10   ;;  %s468_s9 = sphi %s493_s9, %s532_s9  }
   0x3   : > { %p26_p1 = scmp.ge.s32.totalorder %s24_s12, 2  ;;  %p140_p2 = scmp.lt.s32.totalorder %s476_s11, 3 }
   0x5   : > { %s535_s12 = smov (%p26_p1, %s24_s12), 0  ;;  %p141_p3 = pnand %p400_p0, %p140_p2 }
   0x6   : > { %p172_p4 = scmp.lt.s32.totalorder (!%p141_p3), %s468_s9, 1  ;;  %vm210_vm0 = vcmask (!%p141_p3), 1043456   ;;  %vm197_vm1 = vcmask (!%p141_p3), 31744   ;;  %vm299_vm2 = vcmask (!%p141_p3), 64512  }
   0x7   : > { %144 = sbr.rel (%p141_p3) target bundleno = 235 (0xeb), region = 28 }
   0xe   : > { %s537_s9 = smov (!%p172_p4, %s468_s9), 1 }
   0xf   : > { %s403_s13 = sshll.u32 %s537_s9, 2  ;;  %s413_s14 = sshll.u32 %s537_s9, 5 }
  0x10   : > { %s183_s17 = scalar_lea.vmem %s530_s1, %s403_s13  ;;  %s176_s20 = scalar_lea.vmem %s529_s0, %s413_s14 }
  0x11   : > { %v196_v0 = vld [vmem:[%s183_s17] sm:$0xf]  ;;  %v194_v2 = vld [vmem:[%s176_s20 + $0x10] sm:$0xff]  ;;  %v193_v3 = vld [vmem:[%s176_s20 + $0x8] sm:$0xff]  ;;  %s191_s23 = scalar_lea.vmem %s531_s2, %s413_s14 }
  0x12   : > { %v192_v1 = vld [vmem:[%s176_s20] sm:$0xff]  ;;  %420 = vmatprep.subr.msk.mxu0 %vm210_vm0, %v196_v0  ;;  %428 = vmatprep.subr.msk.mxu1 %vm210_vm0, %v196_v0  ;;  %v195_v4 = vld [vmem:[%s176_s20 + $0x18] sm:$0xff] }
  0x13   : > { %421 = vmatpush3.msk.msra.mxu0 %vm210_vm0, %v196_v0  ;;  %429 = vmatpush3.msk.msra.mxu1 %vm210_vm0, %v196_v0 }
  0x14   : > { %422 = vmatprep.mubr.msk.f32.mxu0 %vm197_vm1, %v192_v1  ;;  %425 = vmatprep.mubr.msk.f32.mxu1 %vm197_vm1, %v194_v2 }
  0x15   : > { %423 = vmatmul.mubr.msk.f32.vlgmr.msra.gmra.mrb[0].mxu0 %vm197_vm1, %v193_v3  ;;  %426 = vmatmul.mubr.msk.f32.vlgmr.msra.gmra.mrb[0].mxu1 %vm197_vm1, %v195_v4 }
  0xe8   : > { %v424_v5 = vpop.f32.mrb[0].mxu0  ;;  %v427_v6 = vpop.f32.mrb[0].mxu1 }
  0xe9   : > { %301 = vst.msk [vmem:[%s191_s23 + $0x8] sm:$0xff] %vm299_vm2, %v424_v5  ;;  %303 = vst.msk [vmem:[%s191_s23 + $0x18] sm:$0xff] %vm299_vm2, %v427_v6  ;;  %v280_v7 = vpop.f32.mrb[1].mxu0  ;;  %v290_v8 = vpop.f32.mrb[1].mxu1 }
  0xea   : > { %300 = vst.msk [vmem:[%s191_s23] sm:$0xff] %vm299_vm2, %v280_v7  ;;  %302 = vst.msk [vmem:[%s191_s23 + $0x10] sm:$0xff] %vm299_vm2, %v290_v8 }
  0xeb PF: > { %s12_s11 = sadd.s32 1, %s476_s11   ;;  %s532_s9 = smov %s472_s10 }
  0xec   : > { %p9_p5 = scmp.ge.s32.totalorder %s12_s11, 4   ;;  %s533_s10 = smov %s535_s12 }
  0xee   :  { %11 = sbr.rel (!%p9_p5) target bundleno = 2 (0x2), region = 61 }

</bundles_post_ra>
